<compile_context>
chip_gen: v7x
topology: tpu7x:2x2x1
jax: 0.10.0
libtpu: 0.0.40
codegen_flags: <defaults>
</compile_context>

<pallas_src>
import jax
import jax.numpy as jnp
from jax.experimental import pallas as pl
from jax.experimental.pallas import tpu as pltpu


def _moe_expert_kernel(flags_ref, x_ref, w1_ref, w3_ref, w2_ref, wd_ref,
                       o_ref, acc_ref, wdcol_ref):
    t = pl.program_id(0)   # token-tile index   ("parallel")
    e = pl.program_id(1)   # expert index        (reduction)
    hc = pl.program_id(2)  # hidden-chunk index  (reduction)
    n_e = pl.num_programs(1)
    n_h = pl.num_programs(2)

    # Zero the resident f32 accumulator once per token tile.
    @pl.when(jnp.logical_and(e == 0, hc == 0))
    def _():
        acc_ref[...] = jnp.zeros_like(acc_ref)

    # Per-(token-tile, expert) activity flag from SMEM: skip all three matmuls
    # when no token in this tile routed to expert e.  (Weight blocks are still
    # streamed by the auto-pipeline; see grouped-formulation TODO above.)
    active = flags_ref[t * n_e + e] != 0

    # Extract column e of the resident (TM, E) routing matrix once per
    # (tile, expert) -- not once per H chunk.  Lane-select via iota/where is
    # kept (instead of a dynamic lane slice) for lowering portability.
    @pl.when(jnp.logical_and(active, hc == 0))
    def _():
        wd = wd_ref[...]                                            # (TM, E) f32
        lane = jax.lax.broadcasted_iota(jnp.int32, wd.shape, 1)
        wdcol_ref[...] = jnp.sum(jnp.where(lane == e, wd, 0.0),
                                 axis=-1, keepdims=True)            # (TM, 1)

    @pl.when(active)
    def _():
        x = x_ref[...]        # (TM, D)
        w1 = w1_ref[0]        # (D, TH)
        w3 = w3_ref[0]        # (D, TH)
        w2 = w2_ref[0]        # (TH, D)

        h1 = jnp.dot(x, w1, preferred_element_type=jnp.float32)     # (TM, TH)
        h3 = jnp.dot(x, w3, preferred_element_type=jnp.float32)     # (TM, TH)
        h = (h1 * jax.lax.logistic(h1)) * h3                        # silu(h1)*h3, f32

        # Fold the routing weight into h before the second matmul so the
        # accumulation is a pure dot-accumulate (MRB in-place on v7x) and the
        # VPU scaling touches (TM, TH) instead of (TM, D).
        hw = (wdcol_ref[...] * h).astype(x.dtype)                   # (TM, TH)
        acc_ref[...] += jnp.dot(hw, w2, preferred_element_type=jnp.float32)

    # Write the narrow-dtype output block once, on the last reduction step.
    @pl.when(jnp.logical_and(e == n_e - 1, hc == n_h - 1))
    def _():
        o_ref[...] = acc_ref[...].astype(o_ref.dtype)


def _pick_tile(total: int, target: int, align: int) -> int:
    """Largest `align`-multiple divisor of `total` that is <= target.
    Falls back to `total` (a full-extent block is always legal)."""
    if total <= target:
        return total
    t = (target // align) * align
    while t >= align:
        if total % t == 0:
            return t
        t -= align
    return total


def _generation_defaults():
    kind = ""
    try:
        kind = jax.devices()[0].device_kind.lower()
    except Exception:
        pass
    if "v7" in kind:
        # 64 MiB VMEM per TC, 2 TCs: smaller tiles, conservative scoped limit,
        # keep >= 2 token tiles so the "parallel" axis shards across cores.
        return dict(tm_target=256, th_target=256, tm_align=16, th_align=256,
                    vmem_cap=56 << 20, want_two_token_tiles=True)
    if "v6" in kind:
        # 128 MiB VMEM: large tiles halve weight re-streaming; 256-wide MXU.
        return dict(tm_target=1024, th_target=1024, tm_align=16, th_align=256,
                    vmem_cap=100 << 20, want_two_token_tiles=False)
    if "v5 lite" in kind or "v5e" in kind or "v5lite" in kind:
        # 128 MiB VMEM, 4x128^2 MXU: 128-aligned TH is enough.
        return dict(tm_target=1024, th_target=1024, tm_align=8, th_align=128,
                    vmem_cap=100 << 20, want_two_token_tiles=False)
    # Unknown generation: conservative middle ground.
    return dict(tm_target=512, th_target=512, tm_align=8, th_align=128,
                vmem_cap=64 << 20, want_two_token_tiles=False)


def moe_forward(x, gate_w, w1, w3, w2, num_experts_per_tok=2,
                tm_target=None, th_target=None):
    """x: [B, S, D].  gate_w: [E, D] (f32 recommended for routing).
    w1/w3: [E, D, H], w2: [E, H, D] -- passed through UNCAST.  Store the
    expert weights persistently in bf16 (one-time cast at init); this wrapper
    does NOT re-cast them per call."""
    B, S, D = x.shape
    E, _, H = w1.shape
    T = B * S
    xf = x.reshape(T, D)

    cfg = _generation_defaults()
    if tm_target is None:
        tm_target = cfg["tm_target"]
    if th_target is None:
        th_target = cfg["th_target"]
    if cfg["want_two_token_tiles"]:
        tm_target = min(tm_target, max(T // 2, cfg["tm_align"]))

    TM = _pick_tile(T, tm_target, cfg["tm_align"])   # token tile
    TH = _pick_tile(H, th_target, cfg["th_align"])   # hidden-dim chunk
    n_t = T // TM
    n_h = H // TH

    # --- routing glue (tiny: T x E matmul, top-k over E, softmax over k) ---
    xf32 = xf.astype(jnp.float32)
    scores = xf32 @ gate_w.astype(jnp.float32).T                     # (T, E)
    topk_w, topk_i = jax.lax.top_k(scores, num_experts_per_tok)      # (T, k)
    topk_w = jax.nn.softmax(topk_w, axis=-1)
    onehot = jax.nn.one_hot(topk_i, E, dtype=jnp.float32)            # (T, k, E)
    wd = jnp.einsum("tk,tke->te", topk_w, onehot)                    # (T, E) dense weights

    # Per-(token-tile, expert) activity flags, scalar-prefetched into SMEM
    # (flattened to 1-D to avoid SMEM 2-D padding blowup).
    flags = (jnp.max(wd.reshape(n_t, TM, E), axis=1) > 0.0)
    flags = flags.reshape(n_t * E).astype(jnp.int32)

    grid = (n_t, E, n_h)

    x_b = jnp.dtype(x.dtype).itemsize
    w_b = jnp.dtype(w1.dtype).itemsize
    est = (2 * TM * D * x_b                  # x tile (double-buffered)
           + 2 * TM * D * x_b                # output tile (narrow dtype)
           + TM * D * 4                      # f32 accumulator scratch
           + 2 * TM * max(E, 128) * 4        # routing-weight tile (lane-padded)
           + TM * 128 * 4                    # wd-column scratch (lane-padded)
           + 3 * 2 * D * TH * w_b)           # w1/w3/w2 chunks (double-buffered)
    vmem_limit = int(min(max(int(est * 1.3), 32 << 20), cfg["vmem_cap"]))

    out = pl.pallas_call(
        _moe_expert_kernel,
        out_shape=jax.ShapeDtypeStruct((T, D), x.dtype),
        grid_spec=pltpu.PrefetchScalarGridSpec(
            num_scalar_prefetch=1,
            grid=grid,
            in_specs=[
                pl.BlockSpec((TM, D), lambda t, e, h, flags: (t, 0)),        # x tile (resident)
                pl.BlockSpec((1, D, TH), lambda t, e, h, flags: (e, 0, h)),  # w1[e] H-chunk
                pl.BlockSpec((1, D, TH), lambda t, e, h, flags: (e, 0, h)),  # w3[e] H-chunk
                pl.BlockSpec((1, TH, D), lambda t, e, h, flags: (e, h, 0)),  # w2[e] H-chunk
                pl.BlockSpec((TM, E), lambda t, e, h, flags: (t, 0)),        # routing weights
            ],
            out_specs=pl.BlockSpec((TM, D), lambda t, e, h, flags: (t, 0)),
            scratch_shapes=[
                pltpu.VMEM((TM, D), jnp.float32),   # f32 accumulator
                pltpu.VMEM((TM, 1), jnp.float32),   # routing-weight column
            ],
        ),
        compiler_params=pltpu.CompilerParams(
            dimension_semantics=("parallel", "arbitrary", "arbitrary"),
            vmem_limit_bytes=vmem_limit),
    )(flags, xf, w1, w3, w2, wd)

    return out.reshape(B, S, D)


def moe_reference(x, gate_w, w1, w3, w2, num_experts_per_tok=2):
    """Pure-JAX f32 replica of the PyTorch forward semantics (verification)."""
    B, S, D = x.shape
    E = w1.shape[0]
    xf = x.reshape(-1, D).astype(jnp.float32)
    g = gate_w.astype(jnp.float32)
    w1f = w1.astype(jnp.float32)
    w3f = w3.astype(jnp.float32)
    w2f = w2.astype(jnp.float32)
    scores = xf @ g.T
    tw, ti = jax.lax.top_k(scores, num_experts_per_tok)
    tw = jax.nn.softmax(tw, axis=-1)                                 # (T, k)
    out = jnp.zeros((xf.shape[0], D), jnp.float32)
    for e in range(E):
        h1 = xf @ w1f[e]
        h3 = xf @ w3f[e]
        ye = ((h1 * jax.nn.sigmoid(h1)) * h3) @ w2f[e]               # (T, D)
        we = jnp.sum(jnp.where(ti == e, tw, 0.0), axis=-1, keepdims=True)
        out = out + we * ye
    return out.reshape(B, S, D)


if __name__ == "__main__":
    B, S, D, H, E, K = 2, 8, 32, 64, 4, 2

    key = jax.random.PRNGKey(0)
    kx, kg, k1, k3, k2 = jax.random.split(key, 5)
    # Activations in bf16 (as in a real model); gate kept in f32 for routing.
    x = jax.random.normal(kx, (B, S, D), dtype=jnp.float32).astype(jnp.bfloat16)
    gate_w = jax.random.normal(kg, (E, D), dtype=jnp.float32) * 0.1
    # Expert weights stored persistently in bf16 (one-time cast at "init"),
    # NOT re-cast inside moe_forward on every call.
    w1 = (jax.random.normal(k1, (E, D, H), dtype=jnp.float32) * 0.1).astype(jnp.bfloat16)
    w3 = (jax.random.normal(k3, (E, D, H), dtype=jnp.float32) * 0.1).astype(jnp.bfloat16)
    w2 = (jax.random.normal(k2, (E, H, D), dtype=jnp.float32) * 0.1).astype(jnp.bfloat16)

    out = moe_forward(x, gate_w, w1, w3, w2, num_experts_per_tok=K)
    out = jax.block_until_ready(out)

    ref = moe_reference(x, gate_w, w1, w3, w2, num_experts_per_tok=K)
    assert out.shape == (B, S, D)
    # bf16 MXU matmuls / bf16 output vs f32 reference -> bf16-appropriate tol.
    out_f32 = out.astype(jnp.float32)
    assert jnp.allclose(out_f32, ref, atol=2.5e-2, rtol=2.5e-2), (
        f"max abs err {jnp.max(jnp.abs(out_f32 - ref))}")

    print("KERNEL_OK")
</pallas_src>

<mosaic_0001>
module attributes {stable_mosaic.version = 11 : i64} {
  func.func @_moe_expert_kernel(%arg0: i32, %arg1: i32, %arg2: i32, %arg3: memref<4xi32, #tpu.memory_space<smem>>, %arg4: memref<16x32xbf16, #tpu.memory_space<vmem>>, %arg5: memref<1x32x64xbf16, #tpu.memory_space<vmem>>, %arg6: memref<1x32x64xbf16, #tpu.memory_space<vmem>>, %arg7: memref<1x64x32xbf16, #tpu.memory_space<vmem>>, %arg8: memref<16x4xf32, #tpu.memory_space<vmem>>, %arg9: memref<16x32xbf16, #tpu.memory_space<vmem>>, %arg10: memref<16x32xf32, #tpu.memory_space<vmem>>, %arg11: memref<16x1xf32, #tpu.memory_space<vmem>>) attributes {dimension_semantics = [#tpu.dimension_semantics<parallel>, #tpu.dimension_semantics<arbitrary>, #tpu.dimension_semantics<arbitrary>], iteration_bounds = array<i64: 1, 4, 1>, scalar_prefetch = 1 : i64, scratch_operands = 2 : i64, tpu.core_type = #tpu.core_type<tc>, window_params = [{transform_indices = @transform_0, window_bounds = array<i64: 16, 32>}, {transform_indices = @transform_1, window_bounds = array<i64: 1, 32, 64>}, {transform_indices = @transform_2, window_bounds = array<i64: 1, 32, 64>}, {transform_indices = @transform_3, window_bounds = array<i64: 1, 64, 32>}, {transform_indices = @transform_4, window_bounds = array<i64: 16, 4>}, {transform_indices = @transform_5, window_bounds = array<i64: 16, 32>}]} {
    %c0_i32 = arith.constant 0 : i32
    %0 = arith.cmpi eq, %arg1, %c0_i32 : i32
    %c0_i32_0 = arith.constant 0 : i32
    %1 = arith.cmpi eq, %arg2, %c0_i32_0 : i32
    %2 = arith.andi %0, %1 : i1
    %3 = arith.extui %2 : i1 to i32
    %c0_i32_1 = arith.constant 0 : i32
    %4 = arith.cmpi ne, %3, %c0_i32_1 : i32
    scf.if %4 {
      %cst = arith.constant 0.000000e+00 : f32
      %21 = vector.broadcast %cst : f32 to vector<16x32xf32>
      %c0 = arith.constant 0 : index
      %c0_8 = arith.constant 0 : index
      %22 = vector.load %arg10[%c0, %c0_8] : memref<16x32xf32, #tpu.memory_space<vmem>>, vector<16x32xf32>
      tpu.vector_store %arg10[%c0, %c0_8], %21 {strides = array<i32>} : memref<16x32xf32, #tpu.memory_space<vmem>>, vector<16x32xf32>,
    } else {
    }
    %c4_i32 = arith.constant 4 : i32
    %5 = arith.muli %arg0, %c4_i32 : i32
    %6 = arith.addi %5, %arg1 : i32
    %7 = arith.index_cast %6 : i32 to index
    %8 = memref.load %arg3[%7] : memref<4xi32, #tpu.memory_space<smem>>
    %c0_i32_2 = arith.constant 0 : i32
    %9 = arith.cmpi ne, %8, %c0_i32_2 : i32
    %c0_i32_3 = arith.constant 0 : i32
    %10 = arith.cmpi eq, %arg2, %c0_i32_3 : i32
    %11 = arith.andi %9, %10 : i1
    %12 = arith.extui %11 : i1 to i32
    %c0_i32_4 = arith.constant 0 : i32
    %13 = arith.cmpi ne, %12, %c0_i32_4 : i32
    scf.if %13 {
      %c0 = arith.constant 0 : index
      %c0_8 = arith.constant 0 : index
      %21 = vector.load %arg8[%c0, %c0_8] : memref<16x4xf32, #tpu.memory_space<vmem>>, vector<16x4xf32>
      %22 = tpu.iota {dimensions = array<i32: 1>} : vector<16x4xi32>
      %23 = vector.broadcast %arg1 : i32 to vector<16x4xi32>
      %24 = arith.cmpi eq, %22, %23 : vector<16x4xi32>
      %cst = arith.constant 0.000000e+00 : f32
      %25 = vector.broadcast %cst : f32 to vector<16x4xf32>
      %26 = arith.select %24, %21, %25 : vector<16x4xi1>, vector<16x4xf32>
      %cst_9 = arith.constant dense<0.000000e+00> : vector<16xf32>
      %27 = vector.multi_reduction <add>, %26, %cst_9 [1] : vector<16x4xf32> to vector<16xf32>
      %28 = vector.shape_cast %27 : vector<16xf32> to vector<16x1xf32>
      %c0_10 = arith.constant 0 : index
      %c0_11 = arith.constant 0 : index
      %29 = vector.load %arg11[%c0_10, %c0_11] : memref<16x1xf32, #tpu.memory_space<vmem>>, vector<16x1xf32>
      tpu.vector_store %arg11[%c0_10, %c0_11], %28 {strides = array<i32>} : memref<16x1xf32, #tpu.memory_space<vmem>>, vector<16x1xf32>,
    } else {
    }
    %14 = arith.extui %9 : i1 to i32
    %c0_i32_5 = arith.constant 0 : i32
    %15 = arith.cmpi ne, %14, %c0_i32_5 : i32
    scf.if %15 {
      %c0 = arith.constant 0 : index
      %c0_8 = arith.constant 0 : index
      %21 = vector.load %arg4[%c0, %c0_8] : memref<16x32xbf16, #tpu.memory_space<vmem>>, vector<16x32xbf16>
      %c0_9 = arith.constant 0 : index
      %c0_10 = arith.constant 0 : index
      %c0_11 = arith.constant 0 : index
      %22 = vector.load %arg5[%c0_9, %c0_10, %c0_11] : memref<1x32x64xbf16, #tpu.memory_space<vmem>>, vector<1x32x64xbf16>
      %23 = vector.shape_cast %22 : vector<1x32x64xbf16> to vector<32x64xbf16>
      %c0_12 = arith.constant 0 : index
      %c0_13 = arith.constant 0 : index
      %c0_14 = arith.constant 0 : index
      %24 = vector.load %arg6[%c0_12, %c0_13, %c0_14] : memref<1x32x64xbf16, #tpu.memory_space<vmem>>, vector<1x32x64xbf16>
      %25 = vector.shape_cast %24 : vector<1x32x64xbf16> to vector<32x64xbf16>
      %c0_15 = arith.constant 0 : index
      %c0_16 = arith.constant 0 : index
      %c0_17 = arith.constant 0 : index
      %26 = vector.load %arg7[%c0_15, %c0_16, %c0_17] : memref<1x64x32xbf16, #tpu.memory_space<vmem>>, vector<1x64x32xbf16>
      %27 = vector.shape_cast %26 : vector<1x64x32xbf16> to vector<64x32xbf16>
      %cst = arith.constant dense<0.000000e+00> : vector<16x64xf32>
      %28 = tpu.matmul %21, %23, %cst {dimension_numbers = #tpu.dot_dimension_numbers<[1], [0], [0], [1], [0, 0, 1, 1], [], []>} : vector<16x32xbf16>, vector<32x64xbf16>, vector<16x64xf32> -> vector<16x64xf32>
      %cst_18 = arith.constant dense<0.000000e+00> : vector<16x64xf32>
      %29 = tpu.matmul %21, %25, %cst_18 {dimension_numbers = #tpu.dot_dimension_numbers<[1], [0], [0], [1], [0, 0, 1, 1], [], []>} : vector<16x32xbf16>, vector<32x64xbf16>, vector<16x64xf32> -> vector<16x64xf32>
      %30 = arith.negf %28 : vector<16x64xf32>
      %31 = math.exp %30 : vector<16x64xf32>
      %cst_19 = arith.constant 1.000000e+00 : f32
      %32 = vector.broadcast %cst_19 : f32 to vector<16x64xf32>
      %33 = arith.addf %32, %31 : vector<16x64xf32>
      %34 = arith.divf %32, %33 : vector<16x64xf32>
      %35 = arith.mulf %28, %34 : vector<16x64xf32>
      %36 = arith.mulf %35, %29 : vector<16x64xf32>
      %c0_20 = arith.constant 0 : index
      %c0_21 = arith.constant 0 : index
      %37 = vector.load %arg11[%c0_20, %c0_21] : memref<16x1xf32, #tpu.memory_space<vmem>>, vector<16x1xf32>
      %38 = vector.broadcast %37 : vector<16x1xf32> to vector<16x64xf32>
      %39 = arith.mulf %38, %36 : vector<16x64xf32>
      %40 = arith.truncf %39 : vector<16x64xf32> to vector<16x64xbf16>
      %c0_22 = arith.constant 0 : index
      %c0_23 = arith.constant 0 : index
      %41 = vector.load %arg10[%c0_22, %c0_23] : memref<16x32xf32, #tpu.memory_space<vmem>>, vector<16x32xf32>
      %cst_24 = arith.constant dense<0.000000e+00> : vector<16x32xf32>
      %42 = tpu.matmul %40, %27, %cst_24 {dimension_numbers = #tpu.dot_dimension_numbers<[1], [0], [0], [1], [0, 0, 1, 1], [], []>} : vector<16x64xbf16>, vector<64x32xbf16>, vector<16x32xf32> -> vector<16x32xf32>
      %43 = arith.addf %41, %42 : vector<16x32xf32>
      %c0_25 = arith.constant 0 : index
      %c0_26 = arith.constant 0 : index
      %44 = vector.load %arg10[%c0_25, %c0_26] : memref<16x32xf32, #tpu.memory_space<vmem>>, vector<16x32xf32>
      tpu.vector_store %arg10[%c0_25, %c0_26], %43 {strides = array<i32>} : memref<16x32xf32, #tpu.memory_space<vmem>>, vector<16x32xf32>,
    } else {
    }
    %c3_i32 = arith.constant 3 : i32
    %16 = arith.cmpi eq, %arg1, %c3_i32 : i32
    %c0_i32_6 = arith.constant 0 : i32
    %17 = arith.cmpi eq, %arg2, %c0_i32_6 : i32
    %18 = arith.andi %16, %17 : i1
    %19 = arith.extui %18 : i1 to i32
    %c0_i32_7 = arith.constant 0 : i32
    %20 = arith.cmpi ne, %19, %c0_i32_7 : i32
    scf.if %20 {
      %c0 = arith.constant 0 : index
      %c0_8 = arith.constant 0 : index
      %21 = vector.load %arg10[%c0, %c0_8] : memref<16x32xf32, #tpu.memory_space<vmem>>, vector<16x32xf32>
      %22 = arith.truncf %21 : vector<16x32xf32> to vector<16x32xbf16>
      %c0_9 = arith.constant 0 : index
      %c0_10 = arith.constant 0 : index
      %23 = vector.load %arg9[%c0_9, %c0_10] : memref<16x32xbf16, #tpu.memory_space<vmem>>, vector<16x32xbf16>
      tpu.vector_store %arg9[%c0_9, %c0_10], %22 {strides = array<i32>} : memref<16x32xbf16, #tpu.memory_space<vmem>>, vector<16x32xbf16>,
    } else {
    }
    return
  }
  func.func @transform_0(%arg0: i32, %arg1: i32, %arg2: i32, %arg3: memref<4xi32, #tpu.memory_space<smem>>) -> (i32, i32) {
    %c0_i32 = arith.constant 0 : i32
    %c0_i32_0 = arith.constant 0 : i32
    return %arg0, %c0_i32 : i32, i32
  }
  func.func @transform_1(%arg0: i32, %arg1: i32, %arg2: i32, %arg3: memref<4xi32, #tpu.memory_space<smem>>) -> (i32, i32, i32) {
    %c0_i32 = arith.constant 0 : i32
    %c0_i32_0 = arith.constant 0 : i32
    return %arg1, %c0_i32, %arg2 : i32, i32, i32
  }
  func.func @transform_2(%arg0: i32, %arg1: i32, %arg2: i32, %arg3: memref<4xi32, #tpu.memory_space<smem>>) -> (i32, i32, i32) {
    %c0_i32 = arith.constant 0 : i32
    %c0_i32_0 = arith.constant 0 : i32
    return %arg1, %c0_i32, %arg2 : i32, i32, i32
  }
  func.func @transform_3(%arg0: i32, %arg1: i32, %arg2: i32, %arg3: memref<4xi32, #tpu.memory_space<smem>>) -> (i32, i32, i32) {
    %c0_i32 = arith.constant 0 : i32
    %c0_i32_0 = arith.constant 0 : i32
    return %arg1, %arg2, %c0_i32 : i32, i32, i32
  }
  func.func @transform_4(%arg0: i32, %arg1: i32, %arg2: i32, %arg3: memref<4xi32, #tpu.memory_space<smem>>) -> (i32, i32) {
    %c0_i32 = arith.constant 0 : i32
    %c0_i32_0 = arith.constant 0 : i32
    return %arg0, %c0_i32 : i32, i32
  }
  func.func @transform_5(%arg0: i32, %arg1: i32, %arg2: i32, %arg3: memref<4xi32, #tpu.memory_space<smem>>) -> (i32, i32) {
    %c0_i32 = arith.constant 0 : i32
    %c0_i32_0 = arith.constant 0 : i32
    return %arg0, %c0_i32 : i32, i32
  }
}

</mosaic_0001>

<bundles_post_ra>
// kernel: tpu_custom_call.1
= control target key start
LH: loop header
LB: loop body
LE: loop exit
PB: predicated region body
PF: predicated region fallthrough
CT: control target
= control target key end

     0   :  { %s1154_s0 = inlined_call_operand.vmem [shape: s32[4], index: 0, kind: input, shape index: {}]   ;;  %s1155_s1 = inlined_call_operand.vmem [shape: bf16[16,32], index: 1, kind: input, shape index: {}]   ;;  %s1156_s2 = inlined_call_operand.vmem [shape: bf16[4,32,64], index: 2, kind: input, shape index: {}]   ;;  %s1157_s3 = inlined_call_operand.vmem [shape: bf16[4,32,64], index: 3, kind: input, shape index: {}]   ;;  %s1158_s4 = inlined_call_operand.vmem [shape: bf16[4,64,32], index: 4, kind: input, shape index: {}]   ;;  %s1159_s5 = inlined_call_operand.vmem [shape: f32[16,4], index: 5, kind: input, shape index: {}]   ;;  %s1160_s6 = inlined_call_operand.hbm [shape: bf16[16,32], index: 6, kind: output, shape index: {}]  }
   0x1   :  { %s11_s23 = sshll.u32 %s1154_s0, 4  ;;  %s12_s23 = int_to_ptr.vmem [resolvable:$true] %s11_s23 }
   0x2   :  { %s937_s24 = scalar_lea.vmem %s12_s23, 16  ;;  %p942_p1 = scmp.lt.s32.totalorder %s12_s23, %s12_s23 }
   0x3   :  { %p938_p0 = scmp.ne.s32.totalorder %s12_s23, %s937_s24  ;;  %p943_p2 = scmp.lt.s32.totalorder %s937_s24, %s937_s24 }
   0x5   :  { %p944_p3 = por %p943_p2, %p942_p1 }
   0x7   :  { %p945_p4 = pnand %p944_p3, %p938_p0 }
   0x9   :  { %948 = shalt.err (!%p945_p4)  }
   0xa   :  { %s1005_s25 = smov [#allocation5]  }
   0xb   :  { %14 = dma.vmem_to_smem %s12_s23, 16, %s1005_s25, [#allocation4] }
   0xc   :  { %987 = dma.done.wait [#allocation4], 16 }
   0xd   :  { %988 = vsyncadd [#allocation4], 4294967280 }
   0xe   :  { %16 = sfence }
   0xf   :  { %17 = vsyncpa [#allocation7], 0  ;;  %s1051_s26 = smov 0   ;;  %s1053_s27 = smov 0  }
  0x10   :  { %s1055_s28 = smov 0  }
  0x11 LB: > { %s798_s0 = sadd.s32 4294967295, %s1003_s28   ;;  %s38_s29 = sadd.s32 1, %s999_s27  ;;  %s1003_s28 = sphi %s1055_s28, %s23_s28   ;;  %s999_s27 = sphi %s1053_s27, %s1163_s27   ;;  %s995_s26 = sphi %s1051_s26, %s1162_s26  }
  0x12   : > { %p40_p5 = scmp.ge.s32.totalorder %s38_s29, 4  ;;  %p803_p6 = scmp.ge.s32.totalorder %s1003_s28, 1 }
  0x13   : > { %p273_p7 = scmp.lt.s32.totalorder %s1003_s28, 5 }
  0x14   : > { %s1165_s29 = smov (%p40_p5, %s38_s29), 0 }
  0x15   : > { %p274_p8 = pnand %p803_p6, %p273_p7 }
  0x16   : > { %p332_p9 = scmp.lt.s32.totalorder (!%p274_p8), %s995_s26, 3  ;;  %p366_p10 = scmp.eq.s32.totalorder (!%p274_p8), %s995_s26, 0 }
  0x17   : > { %277 = sbr.rel (%p274_p8) target bundleno = 710 (0x2c6), region = 40 }
  0x1e   : > { %s333_s30 = scalar_select %p332_p9, %s995_s26, 3 }
  0x1f   : > { %371 = sbr.rel (!%p366_p10) target bundleno = 38 (0x26), region = 44  ;;  %vm372_vm0 = vcmask (%p366_p10), 261120   ;;  %v1006_v0 = vmov (%p366_p10), 0.0  }
  0x20   : > { %s834_s7 = sshll.u32 %s333_s30, 4  ;;  %s836_s8 = sshll.u32 %s333_s30, 5  ;;  %373 = vst.msk [vmem:[#allocation2] sm:$0xff] (%p366_p10), %vm372_vm0, %v1006_v0  ;;  %374 = vst.msk [vmem:[#allocation2 + $0x8] sm:$0xff] (%p366_p10), %vm372_vm0, %v1006_v0 }
  0x21   : > { %s1078_s11 = scalar_lea.vmem %s1156_s2, %s834_s7  ;;  %s1083_s14 = scalar_lea.vmem %s1157_s3, %s834_s7 }
  0x22   : > { %s1088_s17 = scalar_lea.vmem %s1158_s4, %s836_s8 }
  0x26 PF: > { %s377_s18 = sld [smem:[#allocation5 + %s995_s26]] }
  0x2c   : > { %p378_p11 = scmp.ne.s32.totalorder %s377_s18, 0 }
  0x2d   : > { %v385_v1 = vlaneseq (%p378_p11)  ;;  %v387_v2 = vstv (%p378_p11), %s995_s26  ;;  %v383_v3 = vld [vmem:[%s1159_s5] sm:$0xff] (%p378_p11)  ;;  %v384_v5 = vld [vmem:[%s1159_s5 + $0x8] sm:$0xff] (%p378_p11)  ;;  %vm391_vm1 = vcmask (%p378_p11), 31744   ;;  %vm398_vm3 = vcmask (%p378_p11), 7168  }
  0x2e   : > { %382 = sbr.rel (!%p378_p11) target bundleno = 199 (0xc7), region = 48 }
  0x2f   : > { %v386_v4 = vand.u32 (%p378_p11), 127, %v385_v1 }
  0x31   : > { %vm388_vm2 = vcmp.eq.s32.totalorder (%p378_p11), %v386_v4, %v387_v2 }
  0x32   : > { %v389_v6 = vsel (%p378_p11), %vm388_vm2, %v383_v3, 0.0  ;;  %v390_v7 = vsel (%p378_p11), %vm388_vm2, %v384_v5, 0.0 }
  0x33   : > { %v392_v8 = vsel (%p378_p11), %vm391_vm1, %v389_v6, 0.0  ;;  %v395_v9 = vsel (%p378_p11), %vm391_vm1, %v390_v7, 0.0 }
  0x34   : > { %393 = vadd.xlane.f32.xlu0 (%p378_p11), %v392_v8 }
  0x38   : > { %396 = vadd.xlane.f32.xlu0 %v395_v9 }
  0xc1   : > { %v394_v10 = vpop.xlane.xlu0 %393 }
  0xc2   : > { %399 = vst.msk [vmem:[#allocation3] sm:$0xff] %vm398_vm3, %v394_v10 }
  0xc5   : > { %v397_v11 = vpop.xlane.xlu0 %396 }
  0xc6   : > { %400 = vst.msk [vmem:[#allocation3 + $0x8] sm:$0xff] %vm398_vm3, %v397_v11 }
  0xc7 PF: > { %p812_p12 = scmp.eq.s32.totalorder %s377_s18, 0 }
  0xc8   : > { %v920_v12 = vld [vmem:[%s1078_s11] sm:$0xff] (!%p812_p12)   ;;  %v1007_v13 = vmov (!%p812_p12), 0.0   ;;  %v921_v14 = vld [vmem:[%s1078_s11 + $0x8] sm:$0xff] (!%p812_p12)   ;;  %vm1008_vm4 = vmmov (!%p812_p12), 0   ;;  %v1009_v16 = vmov (!%p812_p12), 0   ;;  %vm439_vm5 = vcmask (!%p812_p12), 261120  }
  0xc9   : > { %403 = sbr.rel (%p812_p12) target bundleno = 674 (0x2a2), region = 52  ;;  %853 = vmatprep.subr.bf16.mxu1 (!%p812_p12), %v1007_v13  ;;  %869 = vmatprep.subr.bf16.mxu0 (!%p812_p12), %v1007_v13  ;;  %v922_v15 = vld [vmem:[%s1155_s1] sm:$0xff] (!%p812_p12)   ;;  %v553_v18 = vld [vmem:[#allocation3] sm:$0xff] (!%p812_p12)  ;;  %v924_v20 = vld [vmem:[%s1083_s14 + $0x8] sm:$0xff] (!%p812_p12)   ;;  %vm594_vm6 = vcmask (!%p812_p12), 523264  }
  0xca   : > { %854 = vmatpush3.bf16.msra.mxu1 (!%p812_p12), %v920_v12  ;;  %857 = vmatprep.mubr.msk.bf16.mxu1 (!%p812_p12), %vm1008_vm4, %v1007_v13  ;;  %v923_v17 = vld [vmem:[%s1083_s14] sm:$0xff] (!%p812_p12)   ;;  %v926_v22 = vld [vmem:[%s1088_s17 + $0x8] sm:$0xff] (!%p812_p12)   ;;  %v927_v23 = vld [vmem:[%s1088_s17 + $0x10] sm:$0xff] (!%p812_p12)  }
  0xcb   : > { %855 = vmatprep.subr.bf16.mxu1 (!%p812_p12), %v1007_v13  ;;  %877 = vmatprep.mubr.msk.bf16.mxu0 (!%p812_p12), %vm1008_vm4, %v1007_v13  ;;  %v925_v21 = vld [vmem:[%s1088_s17] sm:$0xff] (!%p812_p12)   ;;  %v928_v24 = vld [vmem:[%s1088_s17 + $0x18] sm:$0xff] (!%p812_p12)   ;;  %v569_v52 = vld [vmem:[#allocation2 + $0x8] sm:$0xff] (!%p812_p12) }
  0xcc   : > { %919 = vset.pattern.permute.xlu0 (!%p812_p12), %v1009_v16  ;;  %870 = vmatpush3.bf16.msra.mxu0 (!%p812_p12), %v925_v21  ;;  %v568_v50 = vld [vmem:[#allocation2] sm:$0xff] (!%p812_p12) }
  0xcd   : > { %557 = vperm.xlu0 (!%p812_p12), %919, %v553_v18   ;;  %v554_v19 = vld [vmem:[#allocation3 + $0x8] sm:$0xff] (!%p812_p12)  ;;  %871 = vmatprep.subr.bf16.mxu0 (!%p812_p12), %v1007_v13 }
  0xce   : > { %856 = vmatpush3.bf16.msra.mxu1 (!%p812_p12), %v921_v14 }
  0xcf   : > { %861 = vmatprep.subr.bf16.mxu1 (!%p812_p12), %v1007_v13 }
  0xd0   : > { %872 = vmatpush3.bf16.msra.mxu0 %v926_v22 }
  0xd1   : > { %858 = vmatmul.mubr.msk.bf16.vlgmr.msra.gmra.mrb[0].mxu1 %vm439_vm5, %v922_v15  ;;  %562 = vperm.xlu0 %919, %v554_v19  }
  0xd2   : > { %862 = vmatpush3.bf16.msra.mxu1 %v923_v17  ;;  %865 = vmatprep.mubr.msk.bf16.mxu1 %vm1008_vm4, %v1007_v13 }
  0xd3   : > { %863 = vmatprep.subr.bf16.mxu1 %v1007_v13  ;;  %873 = vmatprep.subr.bf16.mxu0 %v1007_v13 }
  0xd4   : > { %874 = vmatpush3.bf16.msra.mxu0 %v927_v23 }
  0xd5   : > { %875 = vmatprep.subr.bf16.mxu0 %v1007_v13 }
  0xd6   : > { %864 = vmatpush3.bf16.msra.mxu1 %v924_v20 }
  0xd8   : > { %876 = vmatpush3.bf16.msra.mxu0 %v928_v24 }
  0xd9   : > { %866 = vmatmul.mubr.msk.bf16.vlgmr.msra.gmra.mrb[4].mxu1 %vm439_vm5, %v922_v15 }
 0x14c   : > { %v558_v40 = vpop.permute.xlu0 %557 }
 0x150   : > { %v563_v46 = vpop.permute.xlu0 %562 }
 0x1a4   : > { %v477_v25 = vpop.f32.mrb[0].mxu1 }
 0x1a5   : > { %v820_v26 = vmul.f32 -1.442695, %v477_v25  ;;  %v859_v27 = vpop.f32.mrb[1].mxu1 }
 0x1a6   : > { %v480_v28 = vpop.f32.mrb[2].mxu1 }
 0x1a7   : > { %929 = vpow2.f32 %v820_v26  ;;  %v821_v29 = vmul.f32 -1.442695, %v480_v28  ;;  %v860_v30 = vpop.f32.mrb[3].mxu1 }
 0x1a9   : > { %931 = vpow2.f32 %v821_v29 }
 0x1ac   : > { %v530_v31 = vpop.f32.mrb[4].mxu1 }
 0x1ad   : > { %v867_v32 = vpop.f32.mrb[5].mxu1 }
 0x1ae   : > { %v533_v33 = vpop.f32.mrb[6].mxu1 }
 0x1af   : > { %v868_v34 = vpop.f32.mrb[7].mxu1 }
 0x1b1   : > { %v930_v35 = vpop.eup %929 }
 0x1b2   : > { %v543_v36 = vadd.f32 1.0, %v930_v35 }
 0x1b3   : > { %v932_v37 = vpop.eup %931 }
 0x1b4   : > { %933 = vrcp.f32 %v543_v36  ;;  %v544_v38 = vadd.f32 1.0, %v932_v37 }
 0x1b6   : > { %935 = vrcp.f32 %v544_v38 }
 0x1be   : > { %v934_v39 = vpop.eup %933 }
 0x1bf   : > { %v549_v41 = vmul.f32 %v934_v39, %v477_v25 }
 0x1c0   : > { %v936_v42 = vpop.eup %935 }
 0x1c1   : > { %v550_v43 = vmul.f32 %v936_v42, %v480_v28  ;;  %v551_v44 = vmul.f32 %v549_v41, %v530_v31 }
 0x1c3   : > { %v552_v45 = vmul.f32 %v550_v43, %v533_v33  ;;  %v565_v47 = vmul.f32 %v558_v40, %v551_v44 }
 0x1c5   : > { %v566_v48 = vmul.f32 %v563_v46, %v552_v45 }
 0x1c7   : > { %v567_v49 = vpack.c.bf16 %v566_v48, %v565_v47 }
 0x1c9   : > { %878 = vmatmul.mubr.msk.bf16.vlgmr.msra.gmra.mrb[0].mxu0 %vm594_vm6, %v567_v49 }
 0x29c   : > { %v632_v51 = vpop.f32.mrb[0].mxu0 }
 0x29d   : > { %v639_v53 = vadd.f32 %v632_v51, %v568_v50  ;;  %v879_v54 = vpop.f32.mrb[1].mxu0 }
 0x29e   : > { %v635_v55 = vpop.f32.mrb[2].mxu0 }
 0x29f   : > { %641 = vst.msk [vmem:[#allocation2] sm:$0xff] %vm439_vm5, %v639_v53  ;;  %v640_v56 = vadd.f32 %v635_v55, %v569_v52  ;;  %v880_v57 = vpop.f32.mrb[3].mxu0 }
 0x2a1   : > { %642 = vst.msk [vmem:[#allocation2 + $0x8] sm:$0xff] %vm439_vm5, %v640_v56 }
 0x2a2 PF: > { %p643_p13 = scmp.eq.s32.totalorder %s995_s26, 3 }
 0x2a3   : > { %vm658_vm7 = vcmask (%p643_p13), 257024  }
 0x2a4   : > { %647 = sbr.rel (!%p643_p13) target bundleno = 684 (0x2ac), region = 56 }
 0x2a6   : > { %v648_v58 = vld [vmem:[#allocation2] sm:$0xff] (%p643_p13) }
 0x2a7   : > { %v840_v60 = vpack.c.bf16 (%p643_p13), %v648_v58, %v648_v58 }
 0x2a8   : > { %v649_v59 = vld [vmem:[#allocation2 + $0x8] sm:$0xff] (%p643_p13) }
 0x2a9   : > { %v841_v61 = vpack.c.bf16 (%p643_p13), %v649_v59, %v649_v59  ;;  %659 = vst.msk [vmem:[#allocation6] sm:$0xf] (%p643_p13), %vm658_vm7, %v840_v60 }
 0x2ab   : > { %660 = vst.msk [vmem:[#allocation6 + $0x4] sm:$0xf] %vm658_vm7, %v841_v61 }
 0x2ac PF: > { %p1119_p0 = scmp.eq.s32.totalorder %s798_s0, 3  ;;  %s1010_s30 = smov [#allocation6]  }
 0x2ad   : > { %s670_s7 = sshll.u32 %s1010_s30, 4  ;;  %s671_s7 = int_to_ptr.vmem [resolvable:$true] %s670_s7 }
 0x2ae   : > { %s949_s26 = scalar_lea.vmem %s671_s7, 128  ;;  %p956_p4 = scmp.lt.s32.totalorder %s671_s7, %s671_s7 }
 0x2af   : > { %p950_p1 = scmp.ne.s32.totalorder %s671_s7, %s949_s26  ;;  %p957_p5 = scmp.lt.s32.totalorder %s949_s26, %s949_s26 }
 0x2b1   : > { %p951_p2 = pnand %p950_p1, %p1119_p0  ;;  %p958_p6 = por %p957_p5, %p956_p4 }
 0x2b3   : > { %p952_p3 = pneg %p951_p2 }
 0x2b5   : > { %p959_p7 = pnand %p958_p6, %p952_p3 }
 0x2b7   : > { %962 = shalt.err (!%p959_p7)
}
 0x2b8   : > { %s963_s0 = scalar_lea.hbm %s1160_s6, 128 }
 0x2b9   : > { %p964_p8 = scmp.ne.s32.totalorder %s1160_s6, %s963_s0  ;;  %p969_p11 = scmp.lt.u32.totalorder %s963_s0, %s1160_s6 }
 0x2bb   : > { %p965_p9 = pnand %p964_p8, %p1119_p0 }
 0x2bd   : > { %p966_p10 = pneg %p965_p9 }
 0x2bf   : > { %p971_p12 = pnand %p969_p11, %p966_p10 }
 0x2c1   : > { %974 = shalt.err (!%p971_p12)
}
 0x2c2   : > { %s1011_s14 = smov 64   ;;  %s1012_s15 = smov 4  }
 0x2c3   : > { %882 = dma.vmem_to_hbm [thread:$0]  (%p1119_p0), %s671_s7, 128, %s1160_s6, [#allocation7], %s1011_s14, %s1011_s14, %s1012_s15  }
 0x2c4   : > { %990 = dma.done.wait (%p1119_p0), [#allocation7], 128  }
 0x2c5   : > { %992 = vsyncadd (%p1119_p0), [#allocation7], 4294967168 }
 0x2c6 PF: > { %s23_s28 = sadd.s32 1, %s1003_s28   ;;  %s1162_s26 = smov %s999_s27 }
 0x2c7   : > { %p20_p13 = scmp.ge.s32.totalorder %s23_s28, 6   ;;  %s1163_s27 = smov %s1165_s29 }
 0x2c9   :  { %22 = sbr.rel (!%p20_p13) target bundleno = 17 (0x11), region = 96 }
 0x2d0   :  { %686 = vsyncpa [#allocation7], 1 }
 0x2d1   :  { %688 = vsyncpa [#allocation7 + $0x1], 1 }

</bundles_post_ra>
